<compile_context>
chip_gen: v6e
topology: v6e:2x2x1
jax: 0.10.0
libtpu: 0.0.40
codegen_flags: <defaults>
</compile_context>

<pallas_src>
import math

import jax
import jax.numpy as jnp
from jax.experimental import pallas as pl
from jax.experimental.pallas import tpu as pltpu


# --------------------------------------------------------------------------- #
# Tiny prep: exact align_corners=True bilinear 2x upsample (plain JAX, f32).
# --------------------------------------------------------------------------- #

def _upsample2_align_corners(att):
    """Separable gather bilinear 2x upsample matching nn.Upsample(align_corners=True)."""
    B, C, H, W = att.shape
    H2, W2 = 2 * H, 2 * W
    ys = jnp.arange(H2, dtype=jnp.float32) * (float(H - 1) / float(max(H2 - 1, 1)))
    xs = jnp.arange(W2, dtype=jnp.float32) * (float(W - 1) / float(max(W2 - 1, 1)))
    y0 = jnp.clip(jnp.floor(ys).astype(jnp.int32), 0, H - 1)
    y1 = jnp.minimum(y0 + 1, H - 1)
    wy = (ys - y0.astype(jnp.float32))[None, None, :, None]
    x0 = jnp.clip(jnp.floor(xs).astype(jnp.int32), 0, W - 1)
    x1 = jnp.minimum(x0 + 1, W - 1)
    wx = (xs - x0.astype(jnp.float32))[None, None, None, :]
    rows = att[:, :, y0, :] * (1.0 - wy) + att[:, :, y1, :] * wy      # (B,C,H2,W)
    return rows[:, :, :, x0] * (1.0 - wx) + rows[:, :, :, x1] * wx    # (B,C,H2,W2)


# --------------------------------------------------------------------------- #
# Kernel: pure lane-dense broadcast multiply  out = x * gate
# --------------------------------------------------------------------------- #

def _refine_kernel(g1_ref, g3_ref, x1_ref, x2_ref, x3_ref,
                   o1_ref, o2_ref, o3_ref):
    # g1_ref: (1, 1, HW2) f32 = 1 + bilinear_up2(att)   (shared by x1 and x2)
    # g3_ref: (1, 1, HW)  f32 = 1 + att
    # x*_ref/o*_ref: (1, cc*, HW2) / (1, cc3, HW)
    g1 = g1_ref[...]
    g3 = g3_ref[...]

    x1 = x1_ref[...]
    o1_ref[...] = (x1 * g1.astype(x1.dtype)).astype(o1_ref.dtype)

    x2 = x2_ref[...]
    o2_ref[...] = (x2 * g1.astype(x2.dtype)).astype(o2_ref.dtype)

    x3 = x3_ref[...]
    o3_ref[...] = (x3 * g3.astype(x3.dtype)).astype(o3_ref.dtype)


# --------------------------------------------------------------------------- #
# Tiling heuristic: number of channel chunks (second, "parallel" grid axis).
# --------------------------------------------------------------------------- #

def _pick_channel_chunks(c1, c2, c3, hw2, hw, itemsize, batch,
                         budget_bytes=12 << 20, min_steps=4):
    """Pick NC channel chunks.  NC must divide every channel count and each
    chunk (the block's second-minor dim) must be a multiple of 8 or the full
    channel count (the (8,128) block constraint)."""
    g = math.gcd(math.gcd(c1, c2), c3)

    def chunk_ok(nc):
        for c in (c1, c2, c3):
            cc = c // nc
            if not (cc == c or cc % 8 == 0):
                return False
        return True

    def step_bytes(nc):
        # inputs + outputs, double-buffered by the Pallas pipeline
        return 4 * itemsize * ((c1 // nc + c2 // nc) * hw2 + (c3 // nc) * hw)

    divisors = [d for d in range(1, g + 1) if g % d == 0 and chunk_ok(d)]
    # nc = 1 is always valid (chunk == full channel count), so divisors != [].

    nc = divisors[-1]                        # fallback: smallest chunks
    for d in divisors:                       # ascending -> biggest chunk that fits
        if step_bytes(d) <= budget_bytes:
            nc = d
            break

    # Deepen the grid (software pipelining + v7x megacore) while each step
    # still moves a non-trivial amount of data.
    for d in divisors:
        if batch * nc >= min_steps:
            break
        if d > nc and step_bytes(d) >= (512 << 10):
            nc = d

    return nc, step_bytes(nc)


# --------------------------------------------------------------------------- #
# Wrapper
# --------------------------------------------------------------------------- #

def refine(attention, x1, x2, x3):
    """attention: (B, 1, H, W); x1, x2: (B, C, 2H, 2W); x3: (B, C3, H, W)."""
    B, Ca, H, W = attention.shape
    # TODO(synk): only the (usual) single-channel attention map is supported;
    # general per-channel attention broadcast is not implemented.
    assert Ca == 1, "Refine kernel assumes a single-channel attention map"
    H2, W2 = 2 * H, 2 * W
    assert x1.shape[0] == B and x1.shape[2:] == (H2, W2)
    assert x2.shape[0] == B and x2.shape[2:] == (H2, W2)
    assert x3.shape[0] == B and x3.shape[2:] == (H, W)
    C1, C2, C3 = x1.shape[1], x2.shape[1], x3.shape[1]
    HW, HW2 = H * W, H2 * W2

    # Tiny gate precompute (f32): fold the "+ x" into the gate so the kernel is
    # a single multiply per element.
    att_f32 = attention.astype(jnp.float32)
    g1 = (1.0 + _upsample2_align_corners(att_f32)).reshape(B, 1, HW2)
    g3 = (1.0 + att_f32).reshape(B, 1, HW)

    # Lane-dense flattening: the whole spatial extent maps onto the lane axis.
    x1f = x1.reshape(B, C1, HW2)
    x2f = x2.reshape(B, C2, HW2)
    x3f = x3.reshape(B, C3, HW)

    itemsize = max(jnp.dtype(x1.dtype).itemsize,
                   jnp.dtype(x2.dtype).itemsize,
                   jnp.dtype(x3.dtype).itemsize)
    nc, per_step_bytes = _pick_channel_chunks(C1, C2, C3, HW2, HW, itemsize, batch=B)
    cc1, cc2, cc3 = C1 // nc, C2 // nc, C3 // nc
    grid = (B, nc)

    x_elems = B * ((C1 + C2) * HW2 + C3 * HW)
    cost = pl.CostEstimate(
        flops=x_elems,                                   # one mul per gated element
        transcendentals=0,
        bytes_accessed=2 * itemsize * x_elems + 4 * B * nc * (HW2 + HW),
    )

    compiler_kwargs = dict(dimension_semantics=("parallel", "parallel"))
    if per_step_bytes > (24 << 20):
        # Channel counts are not splittable finely enough to stay under the
        # default scoped VMEM -> raise the limit (fine on v5e/v6e's 128 MiB).
        # TODO(synk): on v7x (64 MiB physical VMEM) extremely large,
        # indivisible channel counts may still need a finer split.
        compiler_kwargs["vmem_limit_bytes"] = min(per_step_bytes + (8 << 20), 100 << 20)

    out1, out2, out3 = pl.pallas_call(
        _refine_kernel,
        out_shape=(
            jax.ShapeDtypeStruct((B, C1, HW2), x1.dtype),
            jax.ShapeDtypeStruct((B, C2, HW2), x2.dtype),
            jax.ShapeDtypeStruct((B, C3, HW), x3.dtype),
        ),
        grid_spec=pltpu.PrefetchScalarGridSpec(
            num_scalar_prefetch=0,
            grid=grid,
            in_specs=[
                pl.BlockSpec((1, 1, HW2), lambda b, j: (b, 0, 0)),   # gate for x1/x2
                pl.BlockSpec((1, 1, HW), lambda b, j: (b, 0, 0)),    # gate for x3
                pl.BlockSpec((1, cc1, HW2), lambda b, j: (b, j, 0)),  # x1 (flattened)
                pl.BlockSpec((1, cc2, HW2), lambda b, j: (b, j, 0)),  # x2 (flattened)
                pl.BlockSpec((1, cc3, HW), lambda b, j: (b, j, 0)),   # x3 (flattened)
            ],
            out_specs=(
                pl.BlockSpec((1, cc1, HW2), lambda b, j: (b, j, 0)),
                pl.BlockSpec((1, cc2, HW2), lambda b, j: (b, j, 0)),
                pl.BlockSpec((1, cc3, HW), lambda b, j: (b, j, 0)),
            ),
        ),
        compiler_params=pltpu.CompilerParams(**compiler_kwargs),
        cost_estimate=cost,
    )(g1, g3, x1f, x2f, x3f)

    return (out1.reshape(x1.shape),
            out2.reshape(x2.shape),
            out3.reshape(x3.shape))


# ------------------------- pure-JAX reference ------------------------------ #

def _reference(attention, x1, x2, x3):
    up = _upsample2_align_corners(attention.astype(jnp.float32)).astype(attention.dtype)
    return (x1 + x1 * up, x2 + x2 * up, x3 + x3 * attention)


if __name__ == "__main__":
    B, H, W = 2, 8, 8
    C1, C2, C3 = 4, 4, 8

    key = jax.random.PRNGKey(0)
    ka, k1, k2, k3 = jax.random.split(key, 4)
    attention = jax.nn.sigmoid(jax.random.normal(ka, (B, 1, H, W), dtype=jnp.float32))
    x1 = jax.random.normal(k1, (B, C1, 2 * H, 2 * W), dtype=jnp.float32)
    x2 = jax.random.normal(k2, (B, C2, 2 * H, 2 * W), dtype=jnp.float32)
    x3 = jax.random.normal(k3, (B, C3, H, W), dtype=jnp.float32)

    out1, out2, out3 = refine(attention, x1, x2, x3)
    out1, out2, out3 = jax.block_until_ready((out1, out2, out3))

    ref1, ref2, ref3 = _reference(attention, x1, x2, x3)
    assert out1.shape == x1.shape and out2.shape == x2.shape and out3.shape == x3.shape
    assert jnp.allclose(out1, ref1, atol=1e-5, rtol=1e-5), "x1 mismatch vs reference"
    assert jnp.allclose(out2, ref2, atol=1e-5, rtol=1e-5), "x2 mismatch vs reference"
    assert jnp.allclose(out3, ref3, atol=1e-5, rtol=1e-5), "x3 mismatch vs reference"

    print("KERNEL_OK")
</pallas_src>

<mosaic_0001>
module attributes {stable_mosaic.version = 11 : i64} {
  func.func @_refine_kernel(%arg0: i32, %arg1: i32, %arg2: memref<1x1x256xf32, #tpu.memory_space<vmem>>, %arg3: memref<1x1x64xf32, #tpu.memory_space<vmem>>, %arg4: memref<1x4x256xf32, #tpu.memory_space<vmem>>, %arg5: memref<1x4x256xf32, #tpu.memory_space<vmem>>, %arg6: memref<1x8x64xf32, #tpu.memory_space<vmem>>, %arg7: memref<1x4x256xf32, #tpu.memory_space<vmem>>, %arg8: memref<1x4x256xf32, #tpu.memory_space<vmem>>, %arg9: memref<1x8x64xf32, #tpu.memory_space<vmem>>) attributes {dimension_semantics = [#tpu.dimension_semantics<parallel>, #tpu.dimension_semantics<parallel>], iteration_bounds = array<i64: 2, 1>, scalar_prefetch = 0 : i64, scratch_operands = 0 : i64, tpu.core_type = #tpu.core_type<tc>, window_params = [{transform_indices = @transform_0, window_bounds = array<i64: 1, 1, 256>}, {transform_indices = @transform_1, window_bounds = array<i64: 1, 1, 64>}, {transform_indices = @transform_2, window_bounds = array<i64: 1, 4, 256>}, {transform_indices = @transform_3, window_bounds = array<i64: 1, 4, 256>}, {transform_indices = @transform_4, window_bounds = array<i64: 1, 8, 64>}, {transform_indices = @transform_5, window_bounds = array<i64: 1, 4, 256>}, {transform_indices = @transform_6, window_bounds = array<i64: 1, 4, 256>}, {transform_indices = @transform_7, window_bounds = array<i64: 1, 8, 64>}]} {
    %c0 = arith.constant 0 : index
    %c0_0 = arith.constant 0 : index
    %c0_1 = arith.constant 0 : index
    %0 = vector.load %arg2[%c0, %c0_0, %c0_1] : memref<1x1x256xf32, #tpu.memory_space<vmem>>, vector<1x1x256xf32>
    %c0_2 = arith.constant 0 : index
    %c0_3 = arith.constant 0 : index
    %c0_4 = arith.constant 0 : index
    %1 = vector.load %arg3[%c0_2, %c0_3, %c0_4] : memref<1x1x64xf32, #tpu.memory_space<vmem>>, vector<1x1x64xf32>
    %c0_5 = arith.constant 0 : index
    %c0_6 = arith.constant 0 : index
    %c0_7 = arith.constant 0 : index
    %2 = vector.load %arg4[%c0_5, %c0_6, %c0_7] : memref<1x4x256xf32, #tpu.memory_space<vmem>>, vector<1x4x256xf32>
    %3 = vector.broadcast %0 : vector<1x1x256xf32> to vector<1x4x256xf32>
    %4 = arith.mulf %2, %3 : vector<1x4x256xf32>
    %c0_8 = arith.constant 0 : index
    %c0_9 = arith.constant 0 : index
    %c0_10 = arith.constant 0 : index
    %5 = vector.load %arg7[%c0_8, %c0_9, %c0_10] : memref<1x4x256xf32, #tpu.memory_space<vmem>>, vector<1x4x256xf32>
    tpu.vector_store %arg7[%c0_8, %c0_9, %c0_10], %4 {strides = array<i32>} : memref<1x4x256xf32, #tpu.memory_space<vmem>>, vector<1x4x256xf32>,
    %c0_11 = arith.constant 0 : index
    %c0_12 = arith.constant 0 : index
    %c0_13 = arith.constant 0 : index
    %6 = vector.load %arg5[%c0_11, %c0_12, %c0_13] : memref<1x4x256xf32, #tpu.memory_space<vmem>>, vector<1x4x256xf32>
    %7 = vector.broadcast %0 : vector<1x1x256xf32> to vector<1x4x256xf32>
    %8 = arith.mulf %6, %7 : vector<1x4x256xf32>
    %c0_14 = arith.constant 0 : index
    %c0_15 = arith.constant 0 : index
    %c0_16 = arith.constant 0 : index
    %9 = vector.load %arg8[%c0_14, %c0_15, %c0_16] : memref<1x4x256xf32, #tpu.memory_space<vmem>>, vector<1x4x256xf32>
    tpu.vector_store %arg8[%c0_14, %c0_15, %c0_16], %8 {strides = array<i32>} : memref<1x4x256xf32, #tpu.memory_space<vmem>>, vector<1x4x256xf32>,
    %c0_17 = arith.constant 0 : index
    %c0_18 = arith.constant 0 : index
    %c0_19 = arith.constant 0 : index
    %10 = vector.load %arg6[%c0_17, %c0_18, %c0_19] : memref<1x8x64xf32, #tpu.memory_space<vmem>>, vector<1x8x64xf32>
    %11 = vector.broadcast %1 : vector<1x1x64xf32> to vector<1x8x64xf32>
    %12 = arith.mulf %10, %11 : vector<1x8x64xf32>
    %c0_20 = arith.constant 0 : index
    %c0_21 = arith.constant 0 : index
    %c0_22 = arith.constant 0 : index
    %13 = vector.load %arg9[%c0_20, %c0_21, %c0_22] : memref<1x8x64xf32, #tpu.memory_space<vmem>>, vector<1x8x64xf32>
    tpu.vector_store %arg9[%c0_20, %c0_21, %c0_22], %12 {strides = array<i32>} : memref<1x8x64xf32, #tpu.memory_space<vmem>>, vector<1x8x64xf32>,
    return
  }
  func.func @transform_0(%arg0: i32, %arg1: i32) -> (i32, i32, i32) {
    %c0_i32 = arith.constant 0 : i32
    %c0_i32_0 = arith.constant 0 : i32
    %c0_i32_1 = arith.constant 0 : i32
    return %arg0, %c0_i32, %c0_i32_0 : i32, i32, i32
  }
  func.func @transform_1(%arg0: i32, %arg1: i32) -> (i32, i32, i32) {
    %c0_i32 = arith.constant 0 : i32
    %c0_i32_0 = arith.constant 0 : i32
    %c0_i32_1 = arith.constant 0 : i32
    return %arg0, %c0_i32, %c0_i32_0 : i32, i32, i32
  }
  func.func @transform_2(%arg0: i32, %arg1: i32) -> (i32, i32, i32) {
    %c0_i32 = arith.constant 0 : i32
    %c0_i32_0 = arith.constant 0 : i32
    return %arg0, %arg1, %c0_i32 : i32, i32, i32
  }
  func.func @transform_3(%arg0: i32, %arg1: i32) -> (i32, i32, i32) {
    %c0_i32 = arith.constant 0 : i32
    %c0_i32_0 = arith.constant 0 : i32
    return %arg0, %arg1, %c0_i32 : i32, i32, i32
  }
  func.func @transform_4(%arg0: i32, %arg1: i32) -> (i32, i32, i32) {
    %c0_i32 = arith.constant 0 : i32
    %c0_i32_0 = arith.constant 0 : i32
    return %arg0, %arg1, %c0_i32 : i32, i32, i32
  }
  func.func @transform_5(%arg0: i32, %arg1: i32) -> (i32, i32, i32) {
    %c0_i32 = arith.constant 0 : i32
    %c0_i32_0 = arith.constant 0 : i32
    return %arg0, %arg1, %c0_i32 : i32, i32, i32
  }
  func.func @transform_6(%arg0: i32, %arg1: i32) -> (i32, i32, i32) {
    %c0_i32 = arith.constant 0 : i32
    %c0_i32_0 = arith.constant 0 : i32
    return %arg0, %arg1, %c0_i32 : i32, i32, i32
  }
  func.func @transform_7(%arg0: i32, %arg1: i32) -> (i32, i32, i32) {
    %c0_i32 = arith.constant 0 : i32
    %c0_i32_0 = arith.constant 0 : i32
    return %arg0, %arg1, %c0_i32 : i32, i32, i32
  }
}

</mosaic_0001>

<bundles_post_ra>
// kernel: tpu_custom_call.1
= control target key start
LH: loop header
LB: loop body
LE: loop exit
PB: predicated region body
PF: predicated region fallthrough
CT: control target
= control target key end

     0   :  { %s1586_s0 = inlined_call_operand.hbm [shape: f32[2,1,256], index: 0, kind: input, shape index: {}]   ;;  %s1587_s1 = inlined_call_operand.hbm [shape: f32[2,1,64], index: 1, kind: input, shape index: {}]   ;;  %s1588_s2 = inlined_call_operand.hbm [shape: f32[2,4,256], index: 2, kind: input, shape index: {}]   ;;  %s1589_s3 = inlined_call_operand.hbm [shape: f32[2,4,256], index: 3, kind: input, shape index: {}]   ;;  %s1590_s4 = inlined_call_operand.hbm [shape: f32[2,8,64], index: 4, kind: input, shape index: {}]   ;;  %s1591_s5 = inlined_call_operand.hbm [shape: f32[2,4,256], index: 5, kind: output, shape index: {0}]   ;;  %s1592_s6 = inlined_call_operand.hbm [shape: f32[2,4,256], index: 6, kind: output, shape index: {1}]   ;;  %s1593_s7 = inlined_call_operand.hbm [shape: f32[2,8,64], index: 7, kind: output, shape index: {2}]  }
   0x1   :  { %1606 = sst [smem:[#allocation27_spill]] %s1587_s1 }
   0x2   :  { %1607 = sst [smem:[#allocation28_spill]] %s1589_s3 }
   0x3   :  { %1608 = sst [smem:[#allocation29_spill]] %s1591_s5 }
   0x4   :  { %1609 = sst [smem:[#allocation30_spill]] %s1592_s6 }
   0x5   :  { %1610 = sst [smem:[#allocation31_spill]] %s1593_s7 }
   0x6   :  { %13 = vsyncpa [#allocation3], 0 }
   0x7   :  { %15 = vsyncpa [#allocation3 + $0x1], 0 }
   0x8   :  { %16 = vsyncpa [#allocation6], 0 }
   0x9   :  { %18 = vsyncpa [#allocation6 + $0x1], 0 }
   0xa   :  { %19 = vsyncpa [#allocation9], 0 }
   0xb   :  { %21 = vsyncpa [#allocation9 + $0x1], 0 }
   0xc   :  { %22 = vsyncpa [#allocation4], 0 }
   0xd   :  { %24 = vsyncpa [#allocation4 + $0x1], 0 }
   0xe   :  { %25 = vsyncpa [#allocation13], 0 }
   0xf   :  { %27 = vsyncpa [#allocation13 + $0x1], 0  ;;  %s1271_s24 = smov 0   ;;  %s1273_s25 = smov 0  }
  0x10   :  { %s1275_s26 = smov 0   ;;  %s1277_s27 = smov 0  }
  0x11   :  { %s1279_s28 = smov 0   ;;  %s1281_s29 = smov 0  }
  0x12 LB: > { %1611 = sst [smem:[#allocation20_spill]] %s1201_s24  ;;  %s1302_s30 = sadd.s32 4294967295, %s1221_s29   ;;  %s1221_s29 = sphi %s1281_s29, %s33_s29   ;;  %s1217_s28 = sphi %s1279_s28, %s1638_s28   ;;  %s1213_s27 = sphi %s1277_s27, %s1637_s27   ;;  %s1209_s26 = sphi %s1275_s26, %s1636_s26   ;;  %s1205_s25 = sphi %s1273_s25, %s1640_s25   ;;  %s1201_s24 = sphi %s1271_s24, %s1639_s24  }
  0x13   : > { %1612 = sst [smem:[#allocation21_spill]] %s1209_s26  ;;  %s1594_s8 = sadd.s32 4294967294, %s1221_s29  }
  0x14   : > { %1613 = sst [smem:[#allocation22_spill]] %s1217_s28  ;;  %s45_s9 = sadd.s32 1, %s1217_s28 }
  0x15   : > { %1614 = sst [smem:[#allocation23_spill]] %s1221_s29  ;;  %s52_s10 = sadd.s32 1, %s1209_s26 }
  0x16   : > { %p47_p0 = scmp.ge.s32.totalorder %s45_s9, 2  ;;  %p59_p1 = scmp.ne.s32.totalorder %s1209_s26, %s1205_s25 }
  0x17   : > { %p60_p2 = scmp.eq.s32.totalorder %s1221_s29, 0  ;;  %p65_p3 = scmp.ne.s32.totalorder %s1205_s25, %s1201_s24 }
  0x18   : > { %s1642_s9 = smov (%p47_p0, %s45_s9), 0  ;;  %p66_p5 = scmp.eq.s32.totalorder %s1302_s30, 0 }
  0x19   : > { %1615 = sst [smem:[#allocation24_spill]] %s1642_s9  ;;  %p1314_p4 = por %p60_p2, %p59_p1 }
  0x1a   : > { %s49_s12 = ssub.s32 %s1217_s28, %s1642_s9  ;;  %p201_p6 = scmp.eq.s32.totalorder %s1302_s30, 1 }
  0x1b   : > { %p50_p7 = scmp.eq.s32.totalorder %s49_s12, 0  ;;  %p1322_p8 = por %p66_p5, %p65_p3 }
  0x1c   : > { %p1326_p9 = por %p201_p6, %p59_p1  ;;  %p207_p10 = scmp.eq.s32.totalorder %s1594_s8, 1 }
  0x1d   : > { %s1333_s15 = scalar_select %p50_p7, %s1209_s26, %s52_s10  }
  0x1e   : > { %p1335_p11 = por %p207_p10, %p65_p3  ;;  %p808_p12 = scmp.ge.s32.totalorder %s1221_s29, 2 }
  0x1f   : > { %1619 = sst [smem:[#allocation25_spill]] %s1333_s15  ;;  %p887_p13 = scmp.lt.s32.totalorder %s1221_s29, 2 }
  0x20   : > { %s1620_s16 = scalar_select %p1335_p11, 1, 0 }
  0x21   : > { %s1342_s17 = sand.u32 1, %s1209_s26   ;;  %s1596_s18 = sand.u32 1, %s1221_s29  }
  0x22   : > { %1621 = sst [smem:[#allocation26_spill]] %s1620_s16  ;;  %p1347_p0 = pnand %p887_p13, %p1314_p4 }
  0x23   : > { %s812_s20 = sshll.u32 %s1217_s28, 4  ;;  %s305_s21 = scalar_lea.vmem [#allocation5], %s1342_s17 }
  0x24   : > { %s312_s22 = sshll.u32 %s305_s21, 4  ;;  %s1623_s1 = sld [smem:[#allocation27_spill]]  ;;  %s313_s22 = int_to_ptr.vmem [resolvable:$true] %s312_s22 }
  0x25   : > { %p821_p1 = scmp.ge.s32.totalorder %s1221_s29, 1  ;;  %s1359_s8 = scalar_lea.sflag [#allocation6], %s1596_s18 }
  0x26   : > { %p1363_p2 = pneg %p1347_p0  ;;  %s950_s9 = scalar_lea.vmem %s313_s22, 16 }
  0x27   : > { %p951_p3 = scmp.ne.s32.totalorder %s313_s22, %s950_s9  ;;  %s1223_s21 = smov [#allocation5]  }
  0x28   : > { %s955_s15 = sshll.u32 %s1223_s21, 4  ;;  %s956_s15 = int_to_ptr.vmem [resolvable:$false] %s955_s15 }
  0x29   : > { %p953_p4 = pnand %p951_p3, %p1363_p2  ;;  %p958_p6 = scmp.lt.s32.totalorder %s313_s22, %s956_s15 }
  0x2a   : > { %s310_s12 = scalar_lea.hbm %s1623_s1, %s812_s20  ;;  %s957_s20 = scalar_lea.vmem %s956_s15, 32 }
  0x2b   : > { %p954_p5 = pneg %p953_p4  ;;  %p959_p7 = scmp.lt.s32.totalorder %s957_s20, %s950_s9 }
  0x2d   : > { %p960_p10 = por %p959_p7, %p958_p6 }
  0x2f   : > { %p961_p13 = pnand %p960_p10, %p954_p5 }
  0x31   : > { %964 = shalt.err (!%p961_p13)
}
  0x32   : > { %867 = dma.hbm_to_vmem [thread:$0]  (!%p1347_p0), %s310_s12, 16, %s313_s22, %s1359_s8  }
  0x33   : > { %p378_p3 = scmp.lt.s32.totalorder %s1221_s29, 3  ;;  %s1374_s23 = sshll.u32 %s1342_s17, 3 }
  0x34   : > { %s1377_s10 = sshll.u32 %s1217_s28, 7  ;;  %s1626_s3 = sld [smem:[#allocation28_spill]] }
  0x35   : > { %p1381_p4 = pnand %p821_p1, %p378_p3  ;;  %s344_s18 = scalar_lea.vmem [#allocation8], %s1374_s23 }
  0x36   : > { %s354_s1 = sshll.u32 %s344_s18, 4  ;;  %s1627_s22 = sand.u32 1, %s1221_s29   ;;  %s355_s1 = int_to_ptr.vmem [resolvable:$true] %s354_s1 }
  0x37   : > { %s1392_s12 = scalar_lea.sflag [#allocation9], %s1627_s22  ;;  %s978_s26 = scalar_lea.vmem %s355_s1, 128 }
  0x38   : > { %p979_p5 = scmp.ne.s32.totalorder %s355_s1, %s978_s26  ;;  %s1224_s16 = smov [#allocation8]  }
  0x39   : > { %s983_s24 = sshll.u32 %s1224_s16, 4  ;;  %s984_s24 = int_to_ptr.vmem [resolvable:$false] %s983_s24 }
  0x3a   : > { %s352_s20 = scalar_lea.hbm %s1626_s3, %s1377_s10  ;;  %p981_p6 = pnand %p979_p5, %p1363_p2 }
  0x3b   : > { %s985_s7 = scalar_lea.vmem %s984_s24, 256  ;;  %p986_p1 = scmp.lt.s32.totalorder %s355_s1, %s984_s24 }
  0x3c   : > { %p982_p7 = pneg %p981_p6  ;;  %p987_p10 = scmp.lt.s32.totalorder %s985_s7, %s978_s26 }
  0x3e   : > { %p988_p13 = por %p987_p10, %p986_p1 }
  0x40   : > { %p989_p3 = pnand %p988_p13, %p982_p7 }
  0x42   : > { %992 = shalt.err (!%p989_p3)
}
  0x43   : > { %873 = dma.hbm_to_vmem [thread:$0]  (!%p1347_p0), %s352_s20, 128, %s355_s1, %s1392_s12  }
  0x44   : > { %s809_s18 = sshll.u32 %s1342_s17, 1  ;;  %s840_s15 = sshll.u32 %s1217_s28, 5 }
  0x45   : > { %s293_s22 = scalar_lea.hbm %s1586_s0, %s840_s15  ;;  %s287_s24 = scalar_lea.vmem [#allocation2], %s809_s18 }
  0x46   : > { %s295_s7 = sshll.u32 %s287_s24, 4  ;;  %s331_s29 = scalar_lea.hbm %s1588_s2, %s1377_s10  ;;  %s296_s7 = int_to_ptr.vmem [resolvable:$true] %s295_s7 }
  0x47   : > { %s284_s5 = scalar_lea.sflag [#allocation3], %s1342_s17  ;;  %s1006_s6 = scalar_lea.vmem %s296_s7, 32 }
  0x48   : > { %p1007_p5 = scmp.ne.s32.totalorder %s296_s7, %s1006_s6  ;;  %s1225_s1 = smov [#allocation2]  }
  0x49   : > { %s1011_s20 = sshll.u32 %s1225_s1, 4  ;;  %s1012_s20 = int_to_ptr.vmem [resolvable:$false] %s1011_s20 }
  0x4a   : > { %p1009_p6 = pnand %p1007_p5, %p1363_p2  ;;  %s1013_s28 = scalar_lea.vmem %s1012_s20, 64 }
  0x4b   : > { %p1014_p1 = scmp.lt.s32.totalorder %s296_s7, %s1012_s20  ;;  %p1015_p10 = scmp.lt.s32.totalorder %s1013_s28, %s1006_s6 }
  0x4c   : > { %p1010_p7 = pneg %p1009_p6 }
  0x4d   : > { %p1016_p13 = por %p1015_p10, %p1014_p1 }
  0x4f   : > { %p1017_p3 = pnand %p1016_p13, %p1010_p7 }
  0x51   : > { %1020 = shalt.err (!%p1017_p3)
}
  0x52   : > { %864 = dma.hbm_to_vmem [thread:$0]  (!%p1347_p0), %s293_s22, 32, %s296_s7, %s284_s5  }
  0x53   : > { %s323_s3 = scalar_lea.vmem [#allocation7], %s1374_s23  ;;  %s371_s21 = scalar_lea.hbm %s1590_s4, %s1377_s10 }
  0x54   : > { %s333_s17 = sshll.u32 %s323_s3, 4  ;;  %s1226_s6 = smov [#allocation7]   ;;  %s334_s17 = int_to_ptr.vmem [resolvable:$true] %s333_s17 }
  0x55   : > { %s1034_s16 = scalar_lea.vmem %s334_s17, 128  ;;  %s1039_s28 = sshll.u32 %s1226_s6, 4  ;;  %s1040_s28 = int_to_ptr.vmem [resolvable:$false] %s1039_s28 }
  0x56   : > { %p1035_p5 = scmp.ne.s32.totalorder %s334_s17, %s1034_s16  ;;  %s1041_s24 = scalar_lea.vmem %s1040_s28, 256 }
  0x57   : > { %p1042_p7 = scmp.lt.s32.totalorder %s334_s17, %s1040_s28  ;;  %p1043_p10 = scmp.lt.s32.totalorder %s1041_s24, %s1034_s16 }
  0x58   : > { %p1037_p6 = pnand %p1035_p5, %p1363_p2 }
  0x59   : > { %p1044_p13 = por %p1043_p10, %p1042_p7 }
  0x5a   : > { %p1038_p1 = pneg %p1037_p6 }
  0x5c   : > { %p1045_p3 = pnand %p1044_p13, %p1038_p1 }
  0x5e   : > { %1048 = shalt.err (!%p1045_p3)
}
  0x5f   : > { %870 = dma.hbm_to_vmem [thread:$0]  (!%p1347_p0), %s331_s29, 128, %s334_s17, %s1359_s8  }
  0x60   : > { %s365_s7 = scalar_lea.vmem [#allocation10], %s1374_s23  ;;  %s1227_s20 = smov [#allocation10]  }
  0x61   : > { %s373_s26 = sshll.u32 %s365_s7, 4  ;;  %s1067_s3 = sshll.u32 %s1227_s20, 4  ;;  %s374_s26 = int_to_ptr.vmem [resolvable:$true] %s373_s26  ;;  %s1068_s3 = int_to_ptr.vmem [resolvable:$false] %s1067_s3 }
  0x62   : > { %s1062_s1 = scalar_lea.vmem %s374_s26, 128  ;;  %s1069_s18 = scalar_lea.vmem %s1068_s3, 256 }
  0x63   : > { %p1063_p5 = scmp.ne.s32.totalorder %s374_s26, %s1062_s1  ;;  %p1070_p7 = scmp.lt.s32.totalorder %s374_s26, %s1068_s3 }
  0x64   : > { %p1071_p10 = scmp.lt.s32.totalorder %s1069_s18, %s1062_s1 }
  0x65   : > { %p1065_p6 = pnand %p1063_p5, %p1363_p2 }
  0x66   : > { %p1072_p13 = por %p1071_p10, %p1070_p7 }
  0x67   : > { %p1066_p1 = pneg %p1065_p6 }
  0x69   : > { %p1073_p3 = pnand %p1072_p13, %p1066_p1 }
  0x6b   : > { %1076 = shalt.err (!%p1073_p3)
}
  0x6c   : > { %876 = dma.hbm_to_vmem [thread:$0]  (!%p1347_p0), %s371_s21, 128, %s374_s26, %s1392_s12  }
  0x6d   : > { %382 = sbr.rel (%p1381_p4) target bundleno = 192 (0xc0), region = 40  ;;  %s1442_s11 = sand.u32 (!%p1381_p4), 1, %s1205_s25  }
  0x6e   : > { %s822_s23 = sshll.u32 (!%p1381_p4), %s1442_s11, 1  ;;  %s385_s17 = scalar_lea.sflag (!%p1381_p4), [#allocation3], %s1442_s11 }
  0x6f   : > { %s388_s15 = scalar_lea.vmem (!%p1381_p4), [#allocation2], %s822_s23 }
  0x72   : > { %1180 = dma.done.wait (%p1322_p8), %s385_s17, 32  }
  0x73   : > { %1182 = vsyncadd (%p1322_p8), %s385_s17, 4294967264  ;;  %s1451_s19 = sand.u32 1, %s1302_s30   ;;  %s396_s9 = scalar_lea.vmem [#allocation5], %s1442_s11 }
  0x74   : > { %s394_s10 = scalar_lea.sflag [#allocation6], %s1451_s19 }
  0x75   : > { %1184 = dma.done.wait (%p1322_p8), %s394_s10, 144  }
  0x76   : > { %1186 = vsyncadd (%p1322_p8), %s394_s10, 4294967152  ;;  %s1460_s12 = sshll.u32 %s1442_s11, 3  ;;  %s411_s16 = scalar_lea.sflag [#allocation9], %s1451_s19 }
  0x77   : > { %s405_s21 = scalar_lea.vmem [#allocation7], %s1460_s12  ;;  %s414_s6 = scalar_lea.vmem [#allocation8], %s1460_s12 }
  0x78   : > { %1188 = dma.done.wait (%p1322_p8), %s411_s16, 256  }
  0x79   : > { %1190 = vsyncadd (%p1322_p8), %s411_s16, 4294967040  ;;  %v487_v0 = vlaneseq  ;;  %v483_v4 = vld [vmem:[%s388_s15] sm:$0x3]  ;;  %s475_s30 = scalar_lea.vmem [#allocation12], %s1460_s12  ;;  %s468_s24 = scalar_lea.vmem [#allocation11], %s1460_s12  ;;  %vm510_vm0 = vcmask 523264  }
  0x7a   : > { %s555_s28 = sshll.u32 %s475_s30, 4  ;;  %s539_s5 = sshll.u32 %s468_s24, 4  ;;  %v829_v7 = vld [vmem:[%s396_s9] ss:$0 sm:$0xff]  ;;  %v485_v10 = vld [vmem:[%s405_s21] sm:$0xff]  ;;  %s1473_s28 = int_to_ptr.vmem [resolvable:$true] %s555_s28  ;;  %s1475_s5 = int_to_ptr.vmem [resolvable:$true] %s539_s5 }
  0x7b   : > { %v488_v1 = vshrl.u32 %v487_v0, 7  ;;  %s423_s22 = scalar_lea.vmem [#allocation10], %s1460_s12  ;;  %v499_v9 = vld [vmem:[%s414_s6] sm:$0xff]  ;;  %s843_s13 = sshll.u32 %s1213_s27, 7 }
  0x7c   : > { %v502_v8 = vld [vmem:[%s423_s22] sm:$0xff]  ;;  %s482_s7 = scalar_lea.vmem [#allocation14], %s1460_s12  ;;  %s1628_s3 = sld [smem:[#allocation30_spill]] }
  0x7d   : > { %v489_v2 = vsub.s32 0, %v488_v1  ;;  %v493_v3 = vsub.s32 1, %v488_v1  ;;  %v509_v11 = vmul.f32 %v829_v7, %v502_v8  ;;  %s569_s26 = sshll.u32 %s482_s7, 4  ;;  %s1629_s8 = sld [smem:[#allocation29_spill]]  ;;  %s1488_s26 = int_to_ptr.vmem [resolvable:$true] %s569_s26 }
  0x7e   : > { %s1630_s10 = sld [smem:[#allocation31_spill]]  ;;  %s518_s12 = scalar_lea.sflag [#allocation13], %s1451_s19 }
  0x7f   : > { %v490_v5 = vrot.slane %v483_v4, %v489_v2  ;;  %v494_v6 = vrot.slane %v483_v4, %v493_v3  ;;  %511 = vst.msk [vmem:[%s482_s7] sm:$0xff] %vm510_vm0, %v509_v11  ;;  %s1077_s21 = scalar_lea.vmem %s1473_s28, 128  ;;  %s1228_s16 = smov [#allocation12]  }
  0x80   : > { %p1078_p8 = scmp.ne.s32.totalorder %s1473_s28, %s1077_s21  ;;  %s1081_s6 = sshll.u32 %s1228_s16, 4  ;;  %s1082_s6 = int_to_ptr.vmem [resolvable:$false] %s1081_s6 }
  0x81   : > { %v495_v12 = vcombine.low %v490_v5, %v494_v6  ;;  %s1083_s22 = scalar_lea.vmem %s1082_s6, 256  ;;  %p1084_p4 = scmp.lt.s32.totalorder %s1473_s28, %s1082_s6 }
  0x82   : > { %s1481_s18 = scalar_lea.hbm %s1628_s3, %s843_s13  ;;  %p1079_p0 = pnand %p1078_p8, %p1326_p9 }
  0x83   : > { %v500_v13 = vmul.f32 %v499_v9, %v495_v12  ;;  %v497_v14 = vmul.f32 %v495_v12, %v485_v10  ;;  %s1486_s23 = scalar_lea.hbm %s1629_s8, %s843_s13  ;;  %p1085_p5 = scmp.lt.s32.totalorder %s1083_s22, %s1077_s21 }
  0x84   : > { %s1493_s9 = scalar_lea.hbm %s1630_s10, %s843_s13  ;;  %p1080_p2 = pneg %p1079_p0 }
  0x85   : > { %501 = vst [vmem:[%s475_s30] sm:$0xff] %v500_v13  ;;  %498 = vst [vmem:[%s468_s24] sm:$0xff] %v497_v14  ;;  %p1086_p6 = por %p1085_p5, %p1084_p4 }
  0x87   : > { %p1087_p1 = pnand %p1086_p6, %p1080_p2 }
  0x89   : > { %1090 = shalt.err (!%p1087_p1)
}
  0x8a   : > { %s1091_s30 = scalar_lea.hbm %s1481_s18, 128  ;;  %s1095_s7 = scalar_lea.hbm %s1628_s3, 256 }
  0x8b   : > { %p1092_p7 = scmp.ne.s32.totalorder %s1481_s18, %s1091_s30  ;;  %p1096_p3 = scmp.lt.s32.totalorder %s1481_s18, %s1628_s3 }
  0x8c   : > { %p1097_p8 = scmp.lt.s32.totalorder %s1095_s7, %s1091_s30 }
  0x8d   : > { %p1093_p10 = pnand %p1092_p7, %p1326_p9 }
  0x8e   : > { %p1098_p0 = por %p1097_p8, %p1096_p3 }
  0x8f   : > { %p1094_p13 = pneg %p1093_p10 }
  0x91   : > { %p1099_p2 = pnand %p1098_p0, %p1094_p13 }
  0x93   : > { %1102 = shalt.err (!%p1099_p2)
}
  0x94   : > { %856 = dma.vmem_to_hbm [thread:$0]  (%p1326_p9), %s1473_s28, 128, %s1481_s18, %s518_s12  }
  0x95   : > { %s513_s27 = scalar_lea.sflag [#allocation4], %s1442_s11  ;;  %s1103_s29 = scalar_lea.vmem %s1475_s5, 128 }
  0x96   : > { %p1104_p4 = scmp.ne.s32.totalorder %s1475_s5, %s1103_s29  ;;  %s1229_s17 = smov [#allocation11]  }
  0x97   : > { %s1107_s15 = sshll.u32 %s1229_s17, 4  ;;  %s1108_s15 = int_to_ptr.vmem [resolvable:$false] %s1107_s15 }
  0x98   : > { %p1105_p5 = pnand %p1104_p4, %p1326_p9  ;;  %s1109_s21 = scalar_lea.vmem %s1108_s15, 256 }
  0x99   : > { %p1110_p1 = scmp.lt.s32.totalorder %s1475_s5, %s1108_s15  ;;  %p1111_p7 = scmp.lt.s32.totalorder %s1109_s21, %s1103_s29 }
  0x9a   : > { %p1106_p6 = pneg %p1105_p5 }
  0x9b   : > { %p1112_p10 = por %p1111_p7, %p1110_p1 }
  0x9d   : > { %p1113_p13 = pnand %p1112_p10, %p1106_p6 }
  0x9f   : > { %1116 = shalt.err (!%p1113_p13)
}
  0xa0   : > { %s1117_s28 = scalar_lea.hbm %s1486_s23, 128  ;;  %s1121_s16 = scalar_lea.hbm %s1629_s8, 256 }
  0xa1   : > { %p1118_p3 = scmp.ne.s32.totalorder %s1486_s23, %s1117_s28  ;;  %p1122_p2 = scmp.lt.s32.totalorder %s1486_s23, %s1629_s8 }
  0xa2   : > { %p1123_p4 = scmp.lt.s32.totalorder %s1121_s16, %s1117_s28 }
  0xa3   : > { %p1119_p8 = pnand %p1118_p3, %p1326_p9 }
  0xa4   : > { %p1124_p5 = por %p1123_p4, %p1122_p2 }
  0xa5   : > { %p1120_p0 = pneg %p1119_p8 }
  0xa7   : > { %p1125_p6 = pnand %p1124_p5, %p1120_p0 }
  0xa9   : > { %1128 = shalt.err (!%p1125_p6)
}
  0xaa   : > { %855 = dma.vmem_to_hbm [thread:$0]  (%p1326_p9), %s1475_s5, 128, %s1486_s23, %s513_s27  }
  0xab   : > { %s1129_s30 = scalar_lea.vmem %s1488_s26, 128  ;;  %s1230_s24 = smov [#allocation14]  }
  0xac   : > { %p1130_p1 = scmp.ne.s32.totalorder %s1488_s26, %s1129_s30  ;;  %s1133_s13 = sshll.u32 %s1230_s24, 4  ;;  %s1134_s13 = int_to_ptr.vmem [resolvable:$false] %s1133_s13 }
  0xad   : > { %s1135_s7 = scalar_lea.vmem %s1134_s13, 256  ;;  %p1136_p13 = scmp.lt.s32.totalorder %s1488_s26, %s1134_s13 }
  0xae   : > { %p1131_p7 = pnand %p1130_p1, %p1326_p9  ;;  %p1137_p3 = scmp.lt.s32.totalorder %s1135_s7, %s1129_s30 }
  0xb0   : > { %p1132_p10 = pneg %p1131_p7  ;;  %p1138_p8 = por %p1137_p3, %p1136_p13 }
  0xb2   : > { %p1139_p0 = pnand %p1138_p8, %p1132_p10 }
  0xb4   : > { %1142 = shalt.err (!%p1139_p0)
}
  0xb5   : > { %s1143_s1 = scalar_lea.hbm %s1493_s9, 128  ;;  %s1147_s20 = scalar_lea.hbm %s1630_s10, 256 }
  0xb6   : > { %p1144_p2 = scmp.ne.s32.totalorder %s1493_s9, %s1143_s1  ;;  %p1148_p6 = scmp.lt.s32.totalorder %s1493_s9, %s1630_s10 }
  0xb7   : > { %p1149_p1 = scmp.lt.s32.totalorder %s1147_s20, %s1143_s1 }
  0xb8   : > { %p1145_p4 = pnand %p1144_p2, %p1326_p9 }
  0xb9   : > { %p1150_p7 = por %p1149_p1, %p1148_p6 }
  0xba   : > { %p1146_p5 = pneg %p1145_p4 }
  0xbc   : > { %p1151_p10 = pnand %p1150_p7, %p1146_p5 }
  0xbe   : > { %1154 = shalt.err (!%p1151_p10)
}
  0xbf   : > { %857 = dma.vmem_to_hbm [thread:$0]  (%p1326_p9), %s1488_s26, 128, %s1493_s9, %s518_s12  }
  0xc0 PF: > { %s1631_s17 = sld [smem:[#allocation20_spill]]  ;;  %p878_p13 = pnand %p808_p12, %p1335_p11 }
  0xc1   : > { %s1633_s21 = sld [smem:[#allocation23_spill]] }
  0xc2   : > { %p879_p3 = pneg %p878_p13 }
  0xc6   : > { %s581_s28 = sand.u32 1, %s1631_s17  }
  0xc7   : > { %s582_s11 = scalar_lea.sflag [#allocation4], %s581_s28 }
  0xc8   : > { %1192 = dma.done.wait (%p879_p3), %s582_s11, 128  }
  0xc9   : > { %1194 = vsyncadd (%p879_p3), %s582_s11, 4294967168  ;;  %s1634_s18 = sadd.s32 4294967294, %s1633_s21  }
  0xca   : > { %s590_s14 = sand.u32 1, %s1634_s18  }
  0xcb   : > { %s591_s16 = scalar_lea.sflag [#allocation13], %s590_s14 }
  0xcc   : > { %1196 = dma.done.wait (%p879_p3), %s591_s16, 256  }
  0xcd   : > { %1198 = vsyncadd (%p879_p3), %s591_s16, 4294967040  ;;  %s33_s29 = sadd.s32 1, %s1633_s21   ;;  %s1635_s19 = sld [smem:[#allocation21_spill]] }
  0xce   : > { %p30_p9 = scmp.ge.s32.totalorder %s33_s29, 4   ;;  %s1636_s26 = sld [smem:[#allocation25_spill]] }
  0xcf   : > { %s1637_s27 = sld [smem:[#allocation22_spill]]  ;;  %s1639_s24 = smov %s1205_s25 }
  0xd0   : > { %s1638_s28 = sld [smem:[#allocation24_spill]]  ;;  %32 = sbr.rel (!%p30_p9) target bundleno = 18 (0x12), region = 165 }
  0xd3   : > { %s1640_s25 = smov %s1635_s19 }
  0xd5   :  { %605 = vsyncpa [#allocation3], 1 }
  0xd6   :  { %607 = vsyncpa [#allocation3 + $0x1], 1 }
  0xd7   :  { %608 = vsyncpa [#allocation6], 1 }
  0xd8   :  { %610 = vsyncpa [#allocation6 + $0x1], 1 }
  0xd9   :  { %611 = vsyncpa [#allocation9], 1 }
  0xda   :  { %613 = vsyncpa [#allocation9 + $0x1], 1 }
  0xdb   :  { %614 = vsyncpa [#allocation4], 1 }
  0xdc   :  { %616 = vsyncpa [#allocation4 + $0x1], 1 }
  0xdd   :  { %617 = vsyncpa [#allocation13], 1 }
  0xde   :  { %619 = vsyncpa [#allocation13 + $0x1], 1 }

</bundles_post_ra>
